<compile_context>
chip_gen: v5e
topology: v5e:2x2
jax: 0.10.0
libtpu: 0.0.40
codegen_flags: <defaults>
</compile_context>

<pallas_src>
import functools
import math

import jax
import jax.numpy as jnp
from jax.experimental import pallas as pl
from jax.experimental.pallas import tpu as pltpu


# ----------------------------------------------------------------------------
# Pallas kernel: out_re = x + grid_re (broadcast over the batch-tile dim)
#   g_ref : (tc, L)     f32  batch-invariant real grid factor
#   x_ref : (tb, tc, L) x's native dtype
#   o_ref : (tb, tc, L) f32
# ----------------------------------------------------------------------------
def _add_grid_re_kernel(g_ref, x_ref, o_ref):
    o_ref[...] = x_ref[...].astype(jnp.float32) + g_ref[...][None, :, :]


# Fixed, generation-safe budgets (the review: size from the scoped limit, not
# physical capacity, and set the limit explicitly).  48 MiB fits v5e/v6e
# (128 MiB physical) and leaves headroom on v7x (64 MiB physical).
_VMEM_LIMIT_BYTES = 48 * 1024 * 1024
_BLOCK_BUDGET_BYTES = 20 * 1024 * 1024   # x + out + grid blocks incl. 2x buffering


def _pick_tiles(B, C, L, x_itemsize):
    def fits(tb, tc):
        xb = tb * tc * L * x_itemsize * 2      # x block, double-buffered
        ob = tb * tc * L * 4 * 2               # out block (f32), double-buffered
        gb = tc * L * 4 * 2                    # grid block (f32), double-buffered
        return xb + ob + gb <= _BLOCK_BUDGET_BYTES

    # Channel tile: full C when it fits; otherwise the largest multiple-of-8
    # divisor (BlockSpec's second-to-last dim must be a multiple of 8 or the
    # full extent).
    if fits(1, C):
        tc = C
    else:
        tc = None
        for cand in range(C - C % 8, 7, -8):
            if C % cand == 0 and fits(1, cand):
                tc = cand
                break
        if tc is None:
            # TODO(synk): extremely large H*W rows would additionally need
            # tiling of the flattened spatial axis.
            tc = 8 if C % 8 == 0 else C

    # Batch tile: largest divisor of B whose block still fits the budget.
    tb = 1
    for cand in range(B, 0, -1):
        if B % cand == 0 and fits(cand, tc):
            tb = cand
            break

    # Prefer >= 2 grid steps so a megacore chip (2 TensorCores) gets balanced
    # work on the 'parallel' axes.  Only triggers when the whole problem fit
    # in a single block, where the extra step is essentially free.
    if (C // tc) * (B // tb) < 2 and tb > 1:
        for cand in range(tb // 2, 0, -1):
            if B % cand == 0:
                tb = cand
                break
    return tb, tc


def _add_grid_pallas(x3, grid_re):
    """out_re = x3 + grid_re[None] as a single streaming Pallas kernel.

    x3:      (B, C, L) any float dtype (upcast in-kernel)
    grid_re: (C, L)    float32, batch-invariant real part of the grid
    returns  (B, C, L) float32
    """
    B, C, L = x3.shape
    tb, tc = _pick_tiles(B, C, L, jnp.dtype(x3.dtype).itemsize)

    spec_g = pl.BlockSpec((tc, L), lambda c, b: (c, 0))          # constant over b
    spec_x = pl.BlockSpec((tb, tc, L), lambda c, b: (b, c, 0))
    spec_o = pl.BlockSpec((tb, tc, L), lambda c, b: (b, c, 0))

    # NOTE: if the caller no longer needs x afterwards, input_output_aliases={1: 0}
    # would reuse x's HBM buffer for out_re; kept distinct here because the demo
    # reuses x for the reference check.
    return pl.pallas_call(
        _add_grid_re_kernel,
        out_shape=jax.ShapeDtypeStruct((B, C, L), jnp.float32),
        grid=(C // tc, B // tb),   # batch innermost: grid block stays resident
        in_specs=[spec_g, spec_x],
        out_specs=spec_o,
        compiler_params=pltpu.CompilerParams(
            dimension_semantics=("parallel", "parallel"),
            vmem_limit_bytes=_VMEM_LIMIT_BYTES),
    )(grid_re, x3)


# ----------------------------------------------------------------------------
# Tiny batch-invariant precompute of the grid planes, O(C*(H*W)) in plain JAX.
# Mirrors getembedding(): amplitude * exp(i*(pos*frequency + initialphase)).
# ----------------------------------------------------------------------------
def _grid_planes(params, H, W, theta):
    amp = params["wordemb"].astype(jnp.float32)         # (2, D)
    freq = params["frequencyemb"].astype(jnp.float32)   # (2, D)
    D = amp.shape[1]

    pos_h = jnp.arange(1, H + 1, dtype=jnp.float32)     # (H,)
    pos_w = jnp.arange(1, W + 1, dtype=jnp.float32)     # (W,)
    ph_h = freq[0][:, None] * pos_h[None, :]             # (D, H)
    ph_w = freq[1][:, None] * pos_w[None, :]             # (D, W)
    if theta:
        # PyTorch re-assigns the parameter to (weight % 2*pi) before lookup;
        # functionally equivalent to adding the modulo'd phase offset.
        th = jnp.mod(params["initialphaseemb"].astype(jnp.float32), 2.0 * math.pi)
        ph_h = ph_h + th[0][:, None]
        ph_w = ph_w + th[1][:, None]

    ax, ay = amp[0][:, None], amp[1][:, None]
    # Channels [0:D) carry the H-dependent factor, [D:2D) the W-dependent one.
    grid_re = jnp.concatenate(
        [jnp.broadcast_to((ax * jnp.cos(ph_h))[:, :, None], (D, H, W)),
         jnp.broadcast_to((ay * jnp.cos(ph_w))[:, None, :], (D, H, W))], axis=0)
    grid_im = jnp.concatenate(
        [jnp.broadcast_to((ax * jnp.sin(ph_h))[:, :, None], (D, H, W)),
         jnp.broadcast_to((ay * jnp.sin(ph_w))[:, None, :], (D, H, W))], axis=0)
    return grid_re.reshape(2 * D, H * W), grid_im.reshape(2 * D, H * W)


# ----------------------------------------------------------------------------
# Module: init + forward
# ----------------------------------------------------------------------------
def init_complex_embedding_params(key, dmodel, injection="add", theta=True):
    assert injection in ("cat", "add")
    D = dmodel // 2
    if injection != "add":
        D = D // 4
    k1, k2, k3 = jax.random.split(key, 3)
    p = {
        "wordemb": jax.random.normal(k1, (2, D), jnp.float32),
        "frequencyemb": jax.random.normal(k2, (2, D), jnp.float32),
    }
    if theta:
        p["initialphaseemb"] = jax.random.normal(k3, (2, D), jnp.float32)
    return p


def complex_embedding_forward(params, x, *, injection="add", theta=True):
    B, C, H, W = x.shape
    grid_re, grid_im = _grid_planes(params, H, W, theta)   # (Cg, H*W) each
    Cg, L = grid_re.shape

    if injection == "add":
        assert Cg == C, f"grid channels {Cg} must match x channels {C}"
        out_re = _add_grid_pallas(x.reshape(B, C, L), grid_re)   # (B, C, L) f32
        # Final complex64 assembly: Mosaic/Pallas has no complex dtype, so the
        # re/im interleave stays a single fused XLA elementwise op.  The imag
        # plane is only broadcast here -- never written densely per batch.
        im = jnp.broadcast_to(grid_im.reshape(1, C, H, W), (B, C, H, W))
        return jax.lax.complex(out_re.reshape(B, C, H, W), im)

    # injection == 'cat': grid is batch-invariant -> emit once, broadcast at
    # the concat (no zero-carrier streaming through the kernel).
    grid_c = jax.lax.complex(grid_re, grid_im).reshape(1, Cg, H, W)
    grid_c = jnp.broadcast_to(grid_c, (B, Cg, H, W))
    return jnp.concatenate([x.astype(grid_c.dtype), grid_c], axis=1)


# ----------------------------------------------------------------------------
# Pure-JAX reference (mirrors the PyTorch module) for the correctness check
# ----------------------------------------------------------------------------
def _ref_getembedding(params, idx, length, theta):
    amp = params["wordemb"][idx]          # (D,)
    freq = params["frequencyemb"][idx]    # (D,)
    pos = jnp.arange(1, length + 1, dtype=jnp.float32)[:, None]   # (L, 1)
    phase = pos * freq[None, :]
    if theta:
        th = jnp.mod(params["initialphaseemb"], 2.0 * math.pi)[idx]
        phase = phase + th[None, :]
    return amp[None, :] * jnp.exp(1j * phase)   # (L, D) complex64


def _ref_forward(params, x, injection="add", theta=True):
    B, C, H, W = x.shape
    gx = _ref_getembedding(params, 0, H, theta)   # (H, D)
    gy = _ref_getembedding(params, 1, W, theta)   # (W, D)
    D = gx.shape[1]
    grid_x = jnp.broadcast_to(jnp.transpose(gx)[None, :, :, None], (B, D, H, W))
    grid_y = jnp.broadcast_to(jnp.transpose(gy)[None, :, None, :], (B, D, H, W))
    grid = jnp.concatenate([grid_x, grid_y], axis=1)
    if injection == "add":
        return x + grid
    return jnp.concatenate([x.astype(grid.dtype), grid], axis=1)


if __name__ == "__main__":
    key = jax.random.PRNGKey(0)
    pkey, xkey = jax.random.split(key)

    dmodel = 4                                     # => 2*D == 4 channels of x
    params = init_complex_embedding_params(pkey, dmodel, injection="add", theta=True)
    x = jax.random.normal(xkey, (2, dmodel, 16, 16), jnp.float32)

    fwd = jax.jit(functools.partial(complex_embedding_forward,
                                    injection="add", theta=True))
    out = jax.block_until_ready(fwd(params, x))

    assert out.shape == x.shape, out.shape
    assert out.dtype == jnp.complex64, out.dtype
    ref = _ref_forward(params, x, injection="add", theta=True)
    max_err = float(jnp.max(jnp.abs(out - ref)))
    assert jnp.allclose(out, ref, atol=1e-5, rtol=1e-5), max_err
    assert bool(jnp.all(jnp.isfinite(out.real)) & jnp.all(jnp.isfinite(out.imag)))
    print("KERNEL_OK")
</pallas_src>

<mosaic_0001>
module attributes {stable_mosaic.version = 11 : i64} {
  func.func @_add_grid_re_kernel(%arg0: i32, %arg1: i32, %arg2: memref<4x256xf32, #tpu.memory_space<vmem>>, %arg3: memref<1x4x256xf32, #tpu.memory_space<vmem>>, %arg4: memref<1x4x256xf32, #tpu.memory_space<vmem>>) attributes {dimension_semantics = [#tpu.dimension_semantics<parallel>, #tpu.dimension_semantics<parallel>], iteration_bounds = array<i64: 1, 2>, scalar_prefetch = 0 : i64, scratch_operands = 0 : i64, tpu.core_type = #tpu.core_type<tc>, window_params = [{transform_indices = @transform_0, window_bounds = array<i64: 4, 256>}, {transform_indices = @transform_1, window_bounds = array<i64: 1, 4, 256>}, {transform_indices = @transform_2, window_bounds = array<i64: 1, 4, 256>}]} {
    %c0 = arith.constant 0 : index
    %c0_0 = arith.constant 0 : index
    %c0_1 = arith.constant 0 : index
    %0 = vector.load %arg3[%c0, %c0_0, %c0_1] : memref<1x4x256xf32, #tpu.memory_space<vmem>>, vector<1x4x256xf32>
    %c0_2 = arith.constant 0 : index
    %c0_3 = arith.constant 0 : index
    %1 = vector.load %arg2[%c0_2, %c0_3] : memref<4x256xf32, #tpu.memory_space<vmem>>, vector<4x256xf32>
    %2 = vector.shape_cast %1 : vector<4x256xf32> to vector<1x4x256xf32>
    %3 = arith.addf %0, %2 : vector<1x4x256xf32>
    %c0_4 = arith.constant 0 : index
    %c0_5 = arith.constant 0 : index
    %c0_6 = arith.constant 0 : index
    %4 = vector.load %arg4[%c0_4, %c0_5, %c0_6] : memref<1x4x256xf32, #tpu.memory_space<vmem>>, vector<1x4x256xf32>
    tpu.vector_store %arg4[%c0_4, %c0_5, %c0_6], %3 {strides = array<i32>} : memref<1x4x256xf32, #tpu.memory_space<vmem>>, vector<1x4x256xf32>,
    return
  }
  func.func @transform_0(%arg0: i32, %arg1: i32) -> (i32, i32) {
    %c0_i32 = arith.constant 0 : i32
    %c0_i32_0 = arith.constant 0 : i32
    return %arg0, %c0_i32 : i32, i32
  }
  func.func @transform_1(%arg0: i32, %arg1: i32) -> (i32, i32, i32) {
    %c0_i32 = arith.constant 0 : i32
    %c0_i32_0 = arith.constant 0 : i32
    return %arg1, %arg0, %c0_i32 : i32, i32, i32
  }
  func.func @transform_2(%arg0: i32, %arg1: i32) -> (i32, i32, i32) {
    %c0_i32 = arith.constant 0 : i32
    %c0_i32_0 = arith.constant 0 : i32
    return %arg1, %arg0, %c0_i32 : i32, i32, i32
  }
}

</mosaic_0001>

<bundles_post_ra>
// kernel: custom-call
= control target key start
LH: loop header
LB: loop body
LE: loop exit
PB: predicated region body
PF: predicated region fallthrough
CT: control target
= control target key end

     0   :  { %s105_s0 = inlined_call_operand.vmem [shape: f32[2,4,16,16], index: 0, kind: input, shape index: {}]   ;;  %s106_s1 = inlined_call_operand.vmem [shape: f32[2,4,16,16], index: 1, kind: input, shape index: {}]   ;;  %s107_s2 = inlined_call_operand.hbm [shape: c64[2,4,16,16], index: 2, kind: output, shape index: {}]  }
   0x1   :  { %s3_s11 = scalar_lea.hbm %s107_s2, 128 }
   0x2   :  { %4 = vsyncpa [#allocation0], 0  ;;  %s6_s14 = sshll.u32 %s105_s0, 4  ;;  %s8_s17 = sshll.u32 %s107_s2, 4  ;;  %s7_s14 = int_to_ptr.vmem [resolvable:$true] %s6_s14  ;;  %s9_s17 = int_to_ptr.hbm [resolvable:$true] %s8_s17 }
   0x3   :  { %11 = dma.vmem_to_hbm [thread:$0]  %s7_s14, 2048, %s9_s17, [#allocation0] }
   0x4   :  { %74 = dma.done.wait [#allocation0], 2048  }
   0x5   :  { %75 = vsyncadd [#allocation0], 4294965248 }
   0x6   :  { %14 = vsyncpa [#allocation0], 1 }
   0x7   :  { %15 = vsyncpa [#allocation1], 0  ;;  %s17_s20 = sshll.u32 %s106_s1, 4  ;;  %s19_s21 = sshll.u32 %s3_s11, 4  ;;  %s18_s20 = int_to_ptr.vmem [resolvable:$true] %s17_s20  ;;  %s20_s21 = int_to_ptr.hbm [resolvable:$true] %s19_s21 }
   0x8   :  { %22 = dma.vmem_to_hbm [thread:$0]  %s18_s20, 2048, %s20_s21, [#allocation1] }
   0x9   :  { %76 = dma.done.wait [#allocation1], 2048  }
   0xa   :  { %77 = vsyncadd [#allocation1], 4294965248 }
   0xb   :  { %25 = vsyncpa [#allocation1], 1 }

// kernel: complex_embedding_forward.1
= control target key start
LH: loop header
LB: loop body
LE: loop exit
PB: predicated region body
PF: predicated region fallthrough
CT: control target
= control target key end

     0   :  { %s389_s9 = smov 0   ;;  %s366_s10 = smov 0   ;;  %s403_s0 = inlined_call_operand.vmem [shape: f32[4,256], index: 0, kind: input, shape index: {}]   ;;  %s404_s1 = inlined_call_operand.vmem [shape: f32[2,4,256], index: 1, kind: input, shape index: {}]   ;;  %s405_s2 = inlined_call_operand.vmem [shape: f32[2,4,256], index: 2, kind: output, shape index: {}]  }
   0x1   :  { %s370_s11 = smov 0  }
   0x2 LB: > { %s21_s12 = sadd.s32 1, %s368_s10  ;;  %p317_p0 = scmp.ge.s32.totalorder %s372_s11, 1  ;;  %s372_s11 = sphi %s370_s11, %s12_s11   ;;  %s368_s10 = sphi %s366_s10, %s367_s10   ;;  %s364_s9 = sphi %s389_s9, %s406_s9  }
   0x3   : > { %p22_p1 = scmp.ge.s32.totalorder %s21_s12, 2  ;;  %p142_p2 = scmp.lt.s32.totalorder %s372_s11, 3 }
   0x5   : > { %s408_s12 = smov (%p22_p1, %s21_s12), 0  ;;  %p143_p3 = pnand %p317_p0, %p142_p2 }
   0x6   : > { %p182_p4 = scmp.lt.s32.totalorder (!%p143_p3), %s364_s9, 1 }
   0x7   : > { %146 = sbr.rel (%p143_p3) target bundleno = 19 (0x13), region = 28 }
   0xc   : > { %s410_s9 = smov (!%p182_p4, %s364_s9), 1  ;;  %v201_v0 = vld [vmem:[%s403_s0] sm:$0xff] }
   0xd   : > { %s324_s13 = sshll.u32 %s410_s9, 3 }
   0xe   : > { %s190_s18 = scalar_lea.vmem %s404_s1, %s324_s13  ;;  %s199_s21 = scalar_lea.vmem %s405_s2, %s324_s13 }
   0xf   : > { %v200_v1 = vld [vmem:[%s190_s18] sm:$0xff] }
  0x10   : > { %v202_v2 = vadd.f32 %v201_v0, %v200_v1 }
  0x12   : > { %203 = vst [vmem:[%s199_s21] sm:$0xff] %v202_v2 }
  0x13 PF: > { %s12_s11 = sadd.s32 1, %s372_s11   ;;  %s406_s9 = smov %s368_s10 }
  0x14   : > { %p9_p5 = scmp.ge.s32.totalorder %s12_s11, 4   ;;  %s367_s10 = smov %s408_s12  }
  0x16   :  { %11 = sbr.rel (!%p9_p5) target bundleno = 2 (0x2), region = 61 }

</bundles_post_ra>
